<compile_context>
chip_gen: v5e
topology: v5e:2x2
jax: 0.10.0
libtpu: 0.0.40
codegen_flags: <defaults>
</compile_context>

<pallas_src>
import jax
import jax.numpy as jnp
from jax.experimental import pallas as pl
from jax.experimental.pallas import tpu as pltpu


LN_EPS = 1e-5  # torch.nn.LayerNorm default eps


def _round_up(n, m):
    return ((n + m - 1) // m) * m


def _transition_kernel(min_sigma, max_sigma, feature_dim, layer_width):
    inv_wd = 1.0 / float(layer_width)
    sigma_span = float(max_sigma) - float(min_sigma)

    def kernel(x_ref, w1_ref, b1_ref, g_ref, beta_ref, w2_ref, b2_ref, out_ref):
        x = x_ref[...]

        # fc: x @ W1 + b1 -> (TB, Wd), f32 accumulation on the MXU.
        h = jnp.dot(x, w1_ref[...], preferred_element_type=jnp.float32) + b1_ref[...]

        # LayerNorm over last dim (biased variance, like torch), one-pass stats.
        # Clamp var >= 0: E[h^2] - mean^2 can go slightly negative in f32.
        mean = jnp.sum(h, axis=-1, keepdims=True) * inv_wd
        mean_sq = jnp.sum(h * h, axis=-1, keepdims=True) * inv_wd
        var = jnp.maximum(mean_sq - mean * mean, 0.0)
        hn = (h - mean) * jax.lax.rsqrt(var + LN_EPS)
        hn = hn * g_ref[...] + beta_ref[...]

        # ReLU
        hn = jnp.maximum(hn, 0.0)

        # Fused heads: one (Wd, 2F) matmul -> lane-dense (TB, 2F) result.
        # Cast hn to the weight dtype so the MXU stays on the bf16 path.
        y = jnp.dot(hn.astype(w2_ref.dtype), w2_ref[...],
                    preferred_element_type=jnp.float32) + b2_ref[...]

        # lanes [0, F): mu (identity); lanes [F, 2F): sigmoid -> affine to [min,max].
        # Single-row (1, 2F) lane mask broadcast in the select (1 vreg, no full tile).
        sig = min_sigma + sigma_span * jax.nn.sigmoid(y)
        lane = jax.lax.broadcasted_iota(jnp.int32, (1, y.shape[-1]), 1)
        out_ref[...] = jnp.where(lane < feature_dim, y, sig)

    return kernel


def _vmem_limit_bytes(block_b, d_in, wd, f, x_bytes, w_bytes):
    lane, sub = 128, 8
    pl_ = lambda n: _round_up(max(n, 1), lane)
    ps_ = lambda n: _round_up(max(n, 1), sub)
    x_tile = ps_(block_b) * pl_(d_in) * x_bytes
    out_tile = ps_(block_b) * pl_(2 * f) * 4
    w1 = ps_(d_in) * pl_(wd) * w_bytes
    w2 = ps_(wd) * pl_(2 * f) * w_bytes
    vecs = sub * (3 * pl_(wd) + pl_(2 * f)) * 4
    pipeline = 2 * (x_tile + out_tile + w1 + w2 + vecs)   # double-buffered operands
    interm = ps_(block_b) * (2 * pl_(wd) + 2 * pl_(2 * f)) * 4
    total = pipeline + interm + (2 << 20)
    return int(min(max(total, 16 << 20), 56 << 20))


def transition_model_forward(x, params, *, min_sigma=1e-4, max_sigma=10.0,
                             block_b=None, compute_dtype=jnp.bfloat16):
    """Pallas forward. x: (B, D_in) f32. Returns (mu, sigma), each (B, F) f32."""
    B, D_in = x.shape
    Wd = params["w1"].shape[1]           # layer_width
    F = params["w_mu"].shape[1]          # encoder_feature_dim

    # Fuse the two output heads into one weight/bias (wrapper-side, negligible cost).
    w2 = jnp.concatenate([params["w_mu"], params["w_sigma"]], axis=1)        # (Wd, 2F)
    b2 = jnp.concatenate([params["b_mu"], params["b_sigma"]], axis=0).reshape(1, 2 * F)

    # Streamed operand + matmul weights in compute_dtype (bf16 halves HBM bytes and
    # uses the native MXU path); biases / LN params stay f32, dots accumulate in f32.
    cdt = jnp.dtype(compute_dtype)
    xc = x.astype(cdt)
    w1 = params["w1"].astype(cdt)
    w2 = w2.astype(cdt)

    # Batch tile: multiple of the sublane pack (8 for f32, 16 for bf16), capped at
    # 1024, and split so there are >= 2 grid steps whenever possible (lets the
    # "parallel" batch axis span both TensorCores on v7x; ~free elsewhere).
    sub = 8 * (4 // cdt.itemsize)
    if block_b is None:
        block_b = min(_round_up(B, sub), 1024)
        if B > sub:
            block_b = min(block_b, _round_up(pl.cdiv(B, 2), sub))
    block_b = max(sub, _round_up(block_b, sub))

    grid = (pl.cdiv(B, block_b),)   # ragged last block handled by Pallas masking

    in_specs = [
        pl.BlockSpec((block_b, D_in), lambda i: (i, 0)),   # x: blocked on batch
        pl.BlockSpec((D_in, Wd),      lambda i: (0, 0)),   # w1: resident
        pl.BlockSpec((1, Wd),         lambda i: (0, 0)),   # b1
        pl.BlockSpec((1, Wd),         lambda i: (0, 0)),   # ln gamma
        pl.BlockSpec((1, Wd),         lambda i: (0, 0)),   # ln beta
        pl.BlockSpec((Wd, 2 * F),     lambda i: (0, 0)),   # fused head weight
        pl.BlockSpec((1, 2 * F),      lambda i: (0, 0)),   # fused head bias
    ]
    out_specs = pl.BlockSpec((block_b, 2 * F), lambda i: (i, 0))

    out = pl.pallas_call(
        _transition_kernel(min_sigma, max_sigma, F, Wd),
        out_shape=jax.ShapeDtypeStruct((B, 2 * F), jnp.float32),
        grid=grid,
        in_specs=in_specs,
        out_specs=out_specs,
        compiler_params=pltpu.CompilerParams(
            dimension_semantics=("parallel",),
            vmem_limit_bytes=_vmem_limit_bytes(block_b, D_in, Wd, F,
                                               cdt.itemsize, cdt.itemsize)),
    )(
        xc,
        w1, params["b1"].reshape(1, Wd),
        params["ln_g"].reshape(1, Wd), params["ln_b"].reshape(1, Wd),
        w2, b2,
    )

    mu = out[:, :F]
    sigma = out[:, F:]
    return mu, sigma


def init_params(key, n_actions, encoder_feature_dim, layer_width):
    """Deterministic synthetic parameters (PyTorch (out,in) weights stored transposed)."""
    d_in = encoder_feature_dim + n_actions
    ks = jax.random.split(key, 6)
    scale1 = 1.0 / jnp.sqrt(d_in)
    scale2 = 1.0 / jnp.sqrt(layer_width)
    return {
        "w1": jax.random.uniform(ks[0], (d_in, layer_width), jnp.float32,
                                 -scale1, scale1),
        "b1": jax.random.uniform(ks[1], (layer_width,), jnp.float32,
                                 -scale1, scale1),
        "ln_g": jnp.ones((layer_width,), jnp.float32),
        "ln_b": jnp.zeros((layer_width,), jnp.float32),
        "w_mu": jax.random.uniform(ks[2], (layer_width, encoder_feature_dim),
                                   jnp.float32, -scale2, scale2),
        "b_mu": jax.random.uniform(ks[3], (encoder_feature_dim,), jnp.float32,
                                   -scale2, scale2),
        "w_sigma": jax.random.uniform(ks[4], (layer_width, encoder_feature_dim),
                                      jnp.float32, -scale2, scale2),
        "b_sigma": jax.random.uniform(ks[5], (encoder_feature_dim,), jnp.float32,
                                      -scale2, scale2),
    }


def reference_forward(x, params, *, min_sigma=1e-4, max_sigma=10.0,
                      compute_dtype=jnp.float32):
    """Pure-JAX reference matching the PyTorch forward (optionally emulating the
    kernel's bf16 input/weight casting, with f32 accumulation)."""
    cdt = jnp.dtype(compute_dtype)
    w1 = params["w1"].astype(cdt)
    w_mu = params["w_mu"].astype(cdt)
    w_sg = params["w_sigma"].astype(cdt)
    h = jnp.dot(x.astype(cdt), w1, preferred_element_type=jnp.float32) + params["b1"]
    mean = h.mean(-1, keepdims=True)
    var = ((h - mean) ** 2).mean(-1, keepdims=True)
    hn = (h - mean) / jnp.sqrt(var + LN_EPS)
    hn = hn * params["ln_g"] + params["ln_b"]
    hn = jnp.maximum(hn, 0.0).astype(cdt)
    mu = jnp.dot(hn, w_mu, preferred_element_type=jnp.float32) + params["b_mu"]
    s = jax.nn.sigmoid(jnp.dot(hn, w_sg, preferred_element_type=jnp.float32)
                       + params["b_sigma"])
    sigma = min_sigma + (max_sigma - min_sigma) * s
    return mu, sigma


if __name__ == "__main__":
    # Shapes consistent with the module's forward:
    #   encoder_feature_dim=32, n_actions=6 -> x: (B, 38); layer_width=5 (module default)
    # batch=20 gives a 2-step grid with a ragged last block (16 + 4 rows) -> exercises
    # the no-pad masked path and the >=2-step (v7x megacore) tiling.
    n_actions = 6
    encoder_feature_dim = 32
    layer_width = 5
    batch = 20

    key = jax.random.PRNGKey(0)
    k_x, k_p = jax.random.split(key)
    x = jax.random.normal(k_x, (batch, encoder_feature_dim + n_actions), jnp.float32)
    params = init_params(k_p, n_actions, encoder_feature_dim, layer_width)

    # Full-precision path: tight check against the f32 reference.
    mu32, sg32 = transition_model_forward(x, params, compute_dtype=jnp.float32)
    jax.block_until_ready((mu32, sg32))
    mu_ref, sg_ref = reference_forward(x, params, compute_dtype=jnp.float32)
    assert mu32.shape == (batch, encoder_feature_dim)
    assert sg32.shape == (batch, encoder_feature_dim)
    assert jnp.allclose(mu32, mu_ref, atol=1e-4, rtol=1e-4)
    assert jnp.allclose(sg32, sg_ref, atol=1e-4, rtol=1e-4)

    # Default bf16-streamed path: checked against a bf16-emulating reference.
    mu16, sg16 = transition_model_forward(x, params)   # compute_dtype=bf16
    jax.block_until_ready((mu16, sg16))
    mu_r16, sg_r16 = reference_forward(x, params, compute_dtype=jnp.bfloat16)
    assert mu16.shape == (batch, encoder_feature_dim)
    assert sg16.shape == (batch, encoder_feature_dim)
    assert jnp.allclose(mu16, mu_r16, atol=2e-2, rtol=2e-2)
    assert jnp.allclose(sg16, sg_r16, atol=2e-2, rtol=2e-2)

    print("KERNEL_OK")
</pallas_src>

<mosaic_0001>
module attributes {stable_mosaic.version = 11 : i64} {
  func.func @kernel(%arg0: i32, %arg1: memref<16x38xf32, #tpu.memory_space<vmem>>, %arg2: memref<38x5xf32, #tpu.memory_space<vmem>>, %arg3: memref<1x5xf32, #tpu.memory_space<vmem>>, %arg4: memref<1x5xf32, #tpu.memory_space<vmem>>, %arg5: memref<1x5xf32, #tpu.memory_space<vmem>>, %arg6: memref<5x64xf32, #tpu.memory_space<vmem>>, %arg7: memref<1x64xf32, #tpu.memory_space<vmem>>, %arg8: memref<16x64xf32, #tpu.memory_space<vmem>>) attributes {dimension_semantics = [#tpu.dimension_semantics<parallel>], iteration_bounds = array<i64: 2>, scalar_prefetch = 0 : i64, scratch_operands = 0 : i64, tpu.core_type = #tpu.core_type<tc>, window_params = [{transform_indices = @transform_0, window_bounds = array<i64: 16, 38>}, {pipeline_mode = #tpu.pipeline_mode<synchronous>, transform_indices = @transform_1, window_bounds = array<i64: 38, 5>}, {pipeline_mode = #tpu.pipeline_mode<synchronous>, transform_indices = @transform_2, window_bounds = array<i64: 1, 5>}, {pipeline_mode = #tpu.pipeline_mode<synchronous>, transform_indices = @transform_3, window_bounds = array<i64: 1, 5>}, {pipeline_mode = #tpu.pipeline_mode<synchronous>, transform_indices = @transform_4, window_bounds = array<i64: 1, 5>}, {pipeline_mode = #tpu.pipeline_mode<synchronous>, transform_indices = @transform_5, window_bounds = array<i64: 5, 64>}, {pipeline_mode = #tpu.pipeline_mode<synchronous>, transform_indices = @transform_6, window_bounds = array<i64: 1, 64>}, {transform_indices = @transform_7, window_bounds = array<i64: 16, 64>}]} {
    %c0 = arith.constant 0 : index
    %c0_0 = arith.constant 0 : index
    %0 = vector.load %arg1[%c0, %c0_0] : memref<16x38xf32, #tpu.memory_space<vmem>>, vector<16x38xf32>
    %c0_1 = arith.constant 0 : index
    %c0_2 = arith.constant 0 : index
    %1 = vector.load %arg2[%c0_1, %c0_2] : memref<38x5xf32, #tpu.memory_space<vmem>>, vector<38x5xf32>
    %cst = arith.constant dense<0.000000e+00> : vector<16x5xf32>
    %2 = tpu.matmul %0, %1, %cst {dimension_numbers = #tpu.dot_dimension_numbers<[1], [0], [0], [1], [0, 0, 1, 1], [], []>} : vector<16x38xf32>, vector<38x5xf32>, vector<16x5xf32> -> vector<16x5xf32>
    %c0_3 = arith.constant 0 : index
    %c0_4 = arith.constant 0 : index
    %3 = vector.load %arg3[%c0_3, %c0_4] : memref<1x5xf32, #tpu.memory_space<vmem>>, vector<1x5xf32>
    %4 = vector.broadcast %3 : vector<1x5xf32> to vector<16x5xf32>
    %5 = arith.addf %2, %4 : vector<16x5xf32>
    %cst_5 = arith.constant dense<0.000000e+00> : vector<16xf32>
    %6 = vector.multi_reduction <add>, %5, %cst_5 [1] : vector<16x5xf32> to vector<16xf32>
    %7 = vector.shape_cast %6 : vector<16xf32> to vector<16x1xf32>
    %cst_6 = arith.constant 2.000000e-01 : f32
    %8 = vector.broadcast %cst_6 : f32 to vector<16x1xf32>
    %9 = arith.mulf %7, %8 : vector<16x1xf32>
    %10 = arith.mulf %5, %5 : vector<16x5xf32>
    %cst_7 = arith.constant dense<0.000000e+00> : vector<16xf32>
    %11 = vector.multi_reduction <add>, %10, %cst_7 [1] : vector<16x5xf32> to vector<16xf32>
    %12 = vector.shape_cast %11 : vector<16xf32> to vector<16x1xf32>
    %cst_8 = arith.constant 2.000000e-01 : f32
    %13 = vector.broadcast %cst_8 : f32 to vector<16x1xf32>
    %14 = arith.mulf %12, %13 : vector<16x1xf32>
    %15 = arith.mulf %9, %9 : vector<16x1xf32>
    %16 = arith.subf %14, %15 : vector<16x1xf32>
    %cst_9 = arith.constant 0.000000e+00 : f32
    %17 = vector.broadcast %cst_9 : f32 to vector<16x1xf32>
    %18 = arith.maximumf %16, %17 : vector<16x1xf32>
    %19 = vector.broadcast %9 : vector<16x1xf32> to vector<16x5xf32>
    %20 = arith.subf %5, %19 : vector<16x5xf32>
    %cst_10 = arith.constant 9.99999974E-6 : f32
    %21 = vector.broadcast %cst_10 : f32 to vector<16x1xf32>
    %22 = arith.addf %18, %21 : vector<16x1xf32>
    %23 = math.rsqrt %22 : vector<16x1xf32>
    %24 = vector.broadcast %23 : vector<16x1xf32> to vector<16x5xf32>
    %25 = arith.mulf %20, %24 : vector<16x5xf32>
    %c0_11 = arith.constant 0 : index
    %c0_12 = arith.constant 0 : index
    %26 = vector.load %arg4[%c0_11, %c0_12] : memref<1x5xf32, #tpu.memory_space<vmem>>, vector<1x5xf32>
    %27 = vector.broadcast %26 : vector<1x5xf32> to vector<16x5xf32>
    %28 = arith.mulf %25, %27 : vector<16x5xf32>
    %c0_13 = arith.constant 0 : index
    %c0_14 = arith.constant 0 : index
    %29 = vector.load %arg5[%c0_13, %c0_14] : memref<1x5xf32, #tpu.memory_space<vmem>>, vector<1x5xf32>
    %30 = vector.broadcast %29 : vector<1x5xf32> to vector<16x5xf32>
    %31 = arith.addf %28, %30 : vector<16x5xf32>
    %cst_15 = arith.constant 0.000000e+00 : f32
    %32 = vector.broadcast %cst_15 : f32 to vector<16x5xf32>
    %33 = arith.maximumf %31, %32 : vector<16x5xf32>
    %c0_16 = arith.constant 0 : index
    %c0_17 = arith.constant 0 : index
    %34 = vector.load %arg6[%c0_16, %c0_17] : memref<5x64xf32, #tpu.memory_space<vmem>>, vector<5x64xf32>
    %cst_18 = arith.constant dense<0.000000e+00> : vector<16x64xf32>
    %35 = tpu.matmul %33, %34, %cst_18 {dimension_numbers = #tpu.dot_dimension_numbers<[1], [0], [0], [1], [0, 0, 1, 1], [], []>} : vector<16x5xf32>, vector<5x64xf32>, vector<16x64xf32> -> vector<16x64xf32>
    %c0_19 = arith.constant 0 : index
    %c0_20 = arith.constant 0 : index
    %36 = vector.load %arg7[%c0_19, %c0_20] : memref<1x64xf32, #tpu.memory_space<vmem>>, vector<1x64xf32>
    %37 = vector.broadcast %36 : vector<1x64xf32> to vector<16x64xf32>
    %38 = arith.addf %35, %37 : vector<16x64xf32>
    %39 = arith.negf %38 : vector<16x64xf32>
    %40 = math.exp %39 : vector<16x64xf32>
    %cst_21 = arith.constant 1.000000e+00 : f32
    %41 = vector.broadcast %cst_21 : f32 to vector<16x64xf32>
    %42 = arith.addf %41, %40 : vector<16x64xf32>
    %43 = arith.divf %41, %42 : vector<16x64xf32>
    %cst_22 = arith.constant 9.99989986 : f32
    %44 = vector.broadcast %cst_22 : f32 to vector<16x64xf32>
    %45 = arith.mulf %44, %43 : vector<16x64xf32>
    %cst_23 = arith.constant 9.99999974E-5 : f32
    %46 = vector.broadcast %cst_23 : f32 to vector<16x64xf32>
    %47 = arith.addf %46, %45 : vector<16x64xf32>
    %48 = tpu.iota {dimensions = array<i32: 1>} : vector<1x64xi32>
    %c32_i32 = arith.constant 32 : i32
    %49 = vector.broadcast %c32_i32 : i32 to vector<1x64xi32>
    %50 = arith.cmpi slt, %48, %49 : vector<1x64xi32>
    %51 = vector.shape_cast %50 : vector<1x64xi1> to vector<1x64xi1>
    %52 = vector.broadcast %51 : vector<1x64xi1> to vector<16x64xi1>
    %53 = arith.select %52, %38, %47 : vector<16x64xi1>, vector<16x64xf32>
    %c0_24 = arith.constant 0 : index
    %c0_25 = arith.constant 0 : index
    %54 = vector.load %arg8[%c0_24, %c0_25] : memref<16x64xf32, #tpu.memory_space<vmem>>, vector<16x64xf32>
    tpu.vector_store %arg8[%c0_24, %c0_25], %53 {strides = array<i32>} : memref<16x64xf32, #tpu.memory_space<vmem>>, vector<16x64xf32>,
    return
  }
  func.func @transform_0(%arg0: i32) -> (i32, i32) {
    %c0_i32 = arith.constant 0 : i32
    %c0_i32_0 = arith.constant 0 : i32
    return %arg0, %c0_i32 : i32, i32
  }
  func.func @transform_1(%arg0: i32) -> (i32, i32) {
    %c0_i32 = arith.constant 0 : i32
    %c0_i32_0 = arith.constant 0 : i32
    %c0_i32_1 = arith.constant 0 : i32
    return %c0_i32, %c0_i32_0 : i32, i32
  }
  func.func @transform_2(%arg0: i32) -> (i32, i32) {
    %c0_i32 = arith.constant 0 : i32
    %c0_i32_0 = arith.constant 0 : i32
    %c0_i32_1 = arith.constant 0 : i32
    return %c0_i32, %c0_i32_0 : i32, i32
  }
  func.func @transform_3(%arg0: i32) -> (i32, i32) {
    %c0_i32 = arith.constant 0 : i32
    %c0_i32_0 = arith.constant 0 : i32
    %c0_i32_1 = arith.constant 0 : i32
    return %c0_i32, %c0_i32_0 : i32, i32
  }
  func.func @transform_4(%arg0: i32) -> (i32, i32) {
    %c0_i32 = arith.constant 0 : i32
    %c0_i32_0 = arith.constant 0 : i32
    %c0_i32_1 = arith.constant 0 : i32
    return %c0_i32, %c0_i32_0 : i32, i32
  }
  func.func @transform_5(%arg0: i32) -> (i32, i32) {
    %c0_i32 = arith.constant 0 : i32
    %c0_i32_0 = arith.constant 0 : i32
    %c0_i32_1 = arith.constant 0 : i32
    return %c0_i32, %c0_i32_0 : i32, i32
  }
  func.func @transform_6(%arg0: i32) -> (i32, i32) {
    %c0_i32 = arith.constant 0 : i32
    %c0_i32_0 = arith.constant 0 : i32
    %c0_i32_1 = arith.constant 0 : i32
    return %c0_i32, %c0_i32_0 : i32, i32
  }
  func.func @transform_7(%arg0: i32) -> (i32, i32) {
    %c0_i32 = arith.constant 0 : i32
    %c0_i32_0 = arith.constant 0 : i32
    return %arg0, %c0_i32 : i32, i32
  }
}

</mosaic_0001>

<bundles_post_ra>
// kernel: tpu_custom_call.1
= control target key start
LH: loop header
LB: loop body
LE: loop exit
PB: predicated region body
PF: predicated region fallthrough
CT: control target
= control target key end

     0   :  { %12 = vsyncpa [#allocation3], 0  ;;  %s954_s0 = inlined_call_operand.vmem [shape: f32[20,38], index: 0, kind: input, shape index: {}]   ;;  %s955_s1 = inlined_call_operand.vmem [shape: f32[38,5], index: 1, kind: input, shape index: {}]   ;;  %s956_s2 = inlined_call_operand.vmem [shape: f32[1,5], index: 2, kind: input, shape index: {}]   ;;  %s957_s3 = inlined_call_operand.vmem [shape: f32[1,5], index: 3, kind: input, shape index: {}]   ;;  %s958_s4 = inlined_call_operand.vmem [shape: f32[1,5], index: 4, kind: input, shape index: {}]   ;;  %s959_s5 = inlined_call_operand.vmem [shape: f32[5,64], index: 5, kind: input, shape index: {}]   ;;  %s960_s6 = inlined_call_operand.vmem [shape: f32[1,64], index: 6, kind: input, shape index: {}]   ;;  %s961_s7 = inlined_call_operand.hbm [shape: f32[20,64], index: 7, kind: output, shape index: {}]  }
   0x1   :  { %14 = vsyncpa [#allocation3 + $0x1], 0  ;;  %s793_s24 = smov 0   ;;  %s795_s25 = smov 0  }
   0x2   :  { %s797_s26 = smov 0   ;;  %s799_s27 = smov 0  }
   0x3 LB: > { %s814_s28 = sadd.s32 4294967295, %s748_s27   ;;  %s589_s29 = sadd.s32 4294967294, %s748_s27   ;;  %s748_s27 = sphi %s799_s27, %s970_s27   ;;  %s744_s26 = sphi %s797_s26, %s969_s26   ;;  %s740_s25 = sphi %s795_s25, %s968_s25   ;;  %s736_s24 = sphi %s793_s24, %s967_s24  }
   0x4   : > { %s818_s30 = sadd.s32 1, %s748_s27   ;;  %s179_s8 = sadd.s32 1, %s744_s26 }
   0x5   : > { %s176_s9 = ssub.s32 %s748_s27, %s818_s30  ;;  %p189_p0 = scmp.ne.s32.totalorder %s744_s26, %s740_s25 }
   0x6   : > { %p177_p1 = scmp.eq.s32.totalorder %s176_s9, 0  ;;  %p190_p2 = scmp.eq.s32.totalorder %s814_s28, 1 }
   0x7   : > { %p195_p3 = scmp.ne.s32.totalorder %s740_s25, %s736_s24  ;;  %p196_p4 = scmp.eq.s32.totalorder %s589_s29, 1 }
   0x8   : > { %s829_s10 = scalar_select %p177_p1, %s744_s26, %s179_s8  }
   0x9   : > { %p831_p5 = por %p190_p2, %p189_p0  ;;  %p835_p6 = por %p196_p4, %p195_p3 }
   0xa   : > { %p592_p7 = scmp.ge.s32.totalorder %s748_s27, 1  ;;  %p249_p8 = scmp.lt.s32.totalorder %s748_s27, 3 }
   0xc   : > { %p250_p9 = pnand %p592_p7, %p249_p8 }
   0xd   : > { %s848_s17 = sshll.u32 (!%p250_p9), %s814_s28, 1  ;;  %s282_s29 = sand.u32 (!%p250_p9), 1, %s740_s25  }
   0xe   : > { %253 = sbr.rel (%p250_p9) target bundleno = 518 (0x206), region = 48  ;;  %p290_p10 = scmp.lt.s32.totalorder (!%p250_p9), %s848_s17, 2 }
   0xf   : > { %s593_s13 = sshll.u32 (!%p250_p9), %s282_s29, 4  ;;  %s894_s15 = scalar_lea.sflag (!%p250_p9), [#allocation3], %s282_s29 }
  0x13   : > { %v310_v0 = vld [vmem:[%s955_s1 + $0x20] sm:$0x3f]  ;;  %vm322_vm0 = vcmask 1045504   ;;  %v309_v1 = vld [vmem:[%s955_s1 + $0x18] sm:$0xff]  ;;  %v308_v2 = vld [vmem:[%s955_s1 + $0x10] sm:$0xff]  ;;  %s291_s20 = scalar_select %p290_p10, %s848_s17, 2 }
  0x14   : > { %596 = vmatpush.msk.msra.mxu0 %vm322_vm0, %v310_v0  ;;  %614 = vmatpush.msk.msra.mxu2 %vm322_vm0, %v310_v0  ;;  %v307_v3 = vld [vmem:[%s955_s1 + $0x8] sm:$0xff]  ;;  %v306_v4 = vld [vmem:[%s955_s1] sm:$0xff]  ;;  %vm315_vm1 = vcmask 310272   ;;  %vm349_vm2 = vcmask 39936   ;;  %vm425_vm3 = vcmask 1044480   ;;  %vm501_vm15 = vcmask 523264  }
  0x15   : > { %s595_s23 = sshll.u32 %s291_s20, 3  ;;  %v659_v7 = vld [vmem:[%s956_s2] ss:$0 sm:$0xff]  ;;  %s513_s16 = ssub.s32 (%p831_p5), 3, %s848_s17 }
  0x16   : > { %338 = vmatpush.msra.mxu0 %v309_v1  ;;  %615 = vmatpush.msra.mxu2 %v309_v1  ;;  %s293_s14 = scalar_lea.vmem %s954_s0, %s595_s23  ;;  %v414_v21 = vld [vmem:[%s959_s5] sm:$0x1f]  ;;  %p514_p11 = scmp.lt.s32.totalorder (%p831_p5), %s513_s16, 2 }
  0x17   : > { %v304_v5 = vld [vmem:[%s293_s14] sm:$0xff]  ;;  %v305_v6 = vld [vmem:[%s293_s14 + $0x8] sm:$0xff]  ;;  %599 = vmatpush.msk.msra.mxu1 %vm425_vm3, %v414_v21  ;;  %s284_s14 = scalar_lea.vmem [#allocation2], %s593_s13 }
  0x18   : > { %339 = vmatpush.msra.mxu0 %v308_v2  ;;  %616 = vmatpush.msra.mxu2 %v308_v2  ;;  %v660_v45 = vld [vmem:[%s957_s3] ss:$0 sm:$0xff] }
  0x19   : > { %v661_v49 = vld [vmem:[%s958_s4] ss:$0 sm:$0xff] }
  0x1a   : > { %340 = vmatpush.msra.mxu0 %v307_v3  ;;  %617 = vmatpush.msra.mxu2 %v307_v3  ;;  %v662_v61 = vld [vmem:[%s960_s6] ss:$0 sm:$0xff] }
  0x1c   : > { %341 = vmatpush.msra.mxu0 %v306_v4  ;;  %618 = vmatpush.msra.mxu2 %v306_v4 }
  0x1d   : > { %597 = vmatmul.msk.f32.vlgmr.msra.gmra.mxu0 %vm315_vm1, %v304_v5  ;;  %598 = vmatmul.msk.f32.vlgmr.msra.gmra.mxu2 %vm315_vm1, %v305_v6 }
  0x9a   : > { %v343_v8 = vpop.f32.mrf.mxu0 }
  0x9b   : > { %v344_v9 = vadd.f32 %v659_v7, %v343_v8 }
  0x9d   : > { %v350_v10 = vsel %vm349_vm2, %v344_v9, 0.0  ;;  %v358_v13 = vmul.f32 %v344_v9, %v344_v9 }
  0x9e   : > { %351 = vadd.xlane.f32.xlu0 %v350_v10 }
  0x9f   : > { %v360_v15 = vsel %vm349_vm2, %v358_v13, 0.0 }
  0xa0   : > { %v346_v11 = vpop.f32.mrf.mxu2 }
  0xa1   : > { %v347_v12 = vadd.f32 %v659_v7, %v346_v11 }
  0xa3   : > { %v353_v14 = vsel %vm349_vm2, %v347_v12, 0.0  ;;  %v359_v16 = vmul.f32 %v347_v12, %v347_v12 }
  0xa4   : > { %354 = vadd.xlane.f32.xlu1 %v353_v14 }
  0xa5   : > { %v363_v17 = vsel %vm349_vm2, %v359_v16, 0.0 }
  0xa6   : > { %361 = vadd.xlane.f32.xlu0 %v360_v15 }
  0xac   : > { %364 = vadd.xlane.f32.xlu1 %v363_v17 }
 0x111   : > { %v352_v18 = vpop.xlane.xlu0 %351 }
 0x112   : > { %v356_v19 = vmul.f32 0.2, %v352_v18 }
 0x114   : > { %v368_v23 = vmul.f32 %v356_v19, %v356_v19  ;;  %v374_v44 = vsub.f32 %v344_v9, %v356_v19 }
 0x117   : > { %v355_v20 = vpop.xlane.xlu1 %354 }
 0x118   : > { %v357_v26 = vmul.f32 0.2, %v355_v20 }
 0x119   : > { %v362_v22 = vpop.xlane.xlu0 %361 }
 0x11a   : > { %v366_v24 = vmul.f32 0.2, %v362_v22  ;;  %v369_v29 = vmul.f32 %v357_v26, %v357_v26  ;;  %v375_v53 = vsub.f32 %v347_v12, %v357_v26  ;;  %v494_v12 = vlaneseq }
 0x11c   : > { %v370_v25 = vsub.f32 %v366_v24, %v368_v23  ;;  %v495_v18 = vand.u32 127, %v494_v12 }
 0x11e   : > { %v372_v27 = vmax.f32 %v370_v25, 0.0  ;;  %vm496_vm14 = vcmp.lt.s32.totalorder %v495_v18, 32 }
 0x11f   : > { %v365_v28 = vpop.xlane.xlu1 %364 }
 0x120   : > { %v376_v30 = vadd.f32 1e-05, %v372_v27  ;;  %v367_v31 = vmul.f32 0.2, %v365_v28 }
 0x122   : > { %663 = vrsqrt.f32 %v376_v30  ;;  %v371_v32 = vsub.f32 %v367_v31, %v369_v29  ;;  %vm384_vm5 = vweird.f32 %v376_v30 }
 0x124   : > { %v373_v33 = vmax.f32 %v371_v32, 0.0 }
 0x126   : > { %v377_v34 = vadd.f32 1e-05, %v373_v33 }
 0x128   : > { %v664_v35 = vpop.eup %663  ;;  %665 = vrsqrt.f32 %v377_v34  ;;  %vm394_vm8 = vweird.f32 %v377_v34 }
 0x129   : > { %v379_v36 = vmul.f32 %v664_v35, %v376_v30  ;;  %vm385_vm4 = vweird.f32 %v664_v35 }
 0x12a   : > { %vm386_vm6 = vmor %vm384_vm5, %vm385_vm4 }
 0x12b   : > { %v380_v37 = vmul.f32 %v664_v35, %v379_v36 }
 0x12d   : > { %v381_v38 = vmul.f32 0.5, %v380_v37 }
 0x12e   : > { %v666_v39 = vpop.eup %665 }
 0x12f   : > { %v382_v40 = vsub.f32 1.5, %v381_v38  ;;  %v389_v41 = vmul.f32 %v666_v39, %v377_v34  ;;  %vm395_vm7 = vweird.f32 %v666_v39 }
 0x130   : > { %vm396_vm9 = vmor %vm394_vm8, %vm395_vm7 }
 0x131   : > { %v383_v42 = vmul.f32 %v664_v35, %v382_v40  ;;  %v390_v43 = vmul.f32 %v666_v39, %v389_v41 }
 0x133   : > { %v391_v46 = vmul.f32 0.5, %v390_v43  ;;  %v387_v47 = vsel %vm386_vm6, %v664_v35, %v383_v42 }
 0x134   : > { %v398_v48 = vmul.f32 %v387_v47, %v374_v44 }
 0x135   : > { %v392_v50 = vsub.f32 1.5, %v391_v46 }
 0x136   : > { %v404_v51 = vmul.f32 %v660_v45, %v398_v48 }
 0x137   : > { %v393_v52 = vmul.f32 %v666_v39, %v392_v50 }
 0x138   : > { %v410_v54 = vadd.f32 %v661_v49, %v404_v51 }
 0x139   : > { %v397_v55 = vsel %vm396_vm9, %v666_v39, %v393_v52 }
 0x13a   : > { %v412_v56 = vmax.f32 %v410_v54, 0.0  ;;  %v399_v57 = vmul.f32 %v397_v55, %v375_v53 }
 0x13c   : > { %600 = vmatmul.msk.f32.vlgmr.msra.gmra.mxu1 %vm349_vm2, %v412_v56  ;;  %v405_v58 = vmul.f32 %v660_v45, %v399_v57 }
 0x13e   : > { %v411_v59 = vadd.f32 %v661_v49, %v405_v58 }
 0x140   : > { %v413_v60 = vmax.f32 %v411_v59, 0.0 }
 0x144   : > { %601 = vmatmul.msk.f32.gmra.mxu1 %vm349_vm2, %v413_v60 }
 0x1b9   : > { %v446_v62 = vpop.f32.mrf.mxu1 }
 0x1ba   : > { %v447_v63 = vadd.f32 %v662_v61, %v446_v62 }
 0x1bc   : > { %v602_v0 = vmul.f32 -1.442695, %v447_v63 }
 0x1be   : > { %667 = vpow2.f32 %v602_v0 }
 0x1c1   : > { %v449_v1 = vpop.f32.mrf.mxu1 }
 0x1c2   : > { %v450_v2 = vadd.f32 %v662_v61, %v449_v1 }
 0x1c4   : > { %v668_v3 = vpop.eup %667  ;;  %v603_v4 = vmul.f32 -1.442695, %v450_v2 }
 0x1c5   : > { %v458_v5 = vadd.f32 1.0, %v668_v3 }
 0x1c6   : > { %669 = vpow2.f32 %v603_v4 }
 0x1c7   : > { %671 = vrcp.f32 %v458_v5  ;;  %v471_v11 = vand.u32 2147483648, %v458_v5  ;;  %v469_v14 = vand.u32 2147483647, %v458_v5  ;;  %vm465_vm11 = vweird.f32 %v458_v5 }
 0x1c9   : > { %v472_v17 = vor.u32 1.1754944e-38, %v471_v11  ;;  %vm470_vm13 = vcmp.eq.f32.partialorder %v469_v14, 8.507059e+37 }
 0x1cc   : > { %v670_v6 = vpop.eup %669 }
 0x1cd   : > { %v672_v7 = vpop.eup %671  ;;  %v459_v8 = vadd.f32 1.0, %v670_v6 }
 0x1ce   : > { %v461_v9 = vmul.f32 %v672_v7, %v458_v5  ;;  %vm466_vm10 = vweird.f32 %v672_v7 }
 0x1cf   : > { %673 = vrcp.f32 %v459_v8  ;;  %vm467_vm12 = vmor %vm465_vm11, %vm466_vm10  ;;  %v486_v24 = vand.u32 2147483648, %v459_v8  ;;  %v484_v27 = vand.u32 2147483647, %v459_v8  ;;  %vm480_vm1 = vweird.f32 %v459_v8 }
 0x1d0   : > { %v462_v10 = vsub.f32 1.0, %v461_v9 }
 0x1d1   : > { %v487_v30 = vor.u32 1.1754944e-38, %v486_v24  ;;  %vm485_vm3 = vcmp.eq.f32.partialorder %v484_v27, 8.507059e+37 }
 0x1d2   : > { %v463_v13 = vmul.f32 %v672_v7, %v462_v10 }
 0x1d4   : > { %v464_v15 = vadd.f32 %v672_v7, %v463_v13 }
 0x1d5   : > { %v674_v16 = vpop.eup %673 }
 0x1d6   : > { %v468_v19 = vsel %vm467_vm12, %v672_v7, %v464_v15  ;;  %v476_v20 = vmul.f32 %v674_v16, %v459_v8  ;;  %vm481_vm0 = vweird.f32 %v674_v16 }
 0x1d7   : > { %v473_v21 = vsel %vm470_vm13, %v472_v17, %v468_v19  ;;  %vm482_vm2 = vmor %vm480_vm1, %vm481_vm0 }
 0x1d8   : > { %v490_v22 = vmul.f32 9.9999, %v473_v21  ;;  %v477_v23 = vsub.f32 1.0, %v476_v20 }
 0x1da   : > { %v492_v25 = vadd.f32 0.0001, %v490_v22  ;;  %v478_v26 = vmul.f32 %v674_v16, %v477_v23 }
 0x1dc   : > { %v499_v28 = vsel %vm496_vm14, %v447_v63, %v492_v25  ;;  %v479_v29 = vadd.f32 %v674_v16, %v478_v26 }
 0x1dd   : > { %502 = vst.msk [vmem:[%s284_s14] sm:$0xff] %vm501_vm15, %v499_v28 }
 0x1de   : > { %v483_v31 = vsel %vm482_vm2, %v674_v16, %v479_v29 }
 0x1df   : > { %v488_v32 = vsel %vm485_vm3, %v487_v30, %v483_v31 }
 0x1e0   : > { %v491_v33 = vmul.f32 9.9999, %v488_v32 }
 0x1e1   : > { %511 = sbr.rel (!%p831_p5) target bundleno = 518 (0x206), region = 52 }
 0x1e2   : > { %v493_v34 = vadd.f32 0.0001, %v491_v33 }
 0x1e4   : > { %v500_v35 = vsel %vm496_vm14, %v450_v2, %v493_v34 }
 0x1e5   : > { %503 = vst.msk [vmem:[%s284_s14 + $0x8] sm:$0xff] %vm501_vm15, %v500_v35 }
 0x1e6   : > { %s972_s16 = smov (!%p514_p11, %s513_s16), 2 }
 0x1e7   : > { %s606_s18 = sshll.u32 %s972_s16, 3 }
 0x1e8   : > { %s517_s19 = ssub.s32 16, %s606_s18 }
 0x1e9   : > { %s518_s20 = sshll.u32 %s517_s19, 4 }
 0x1ea   : > { %519 = vsyncadd %s894_s15, %s518_s20  ;;  %p903_p12 = scmp.ne.s32.totalorder %s606_s18, 0  ;;  %s613_s11 = sshll.u32 %s814_s28, 4 }
 0x1eb   : > { %s522_s17 = scalar_lea.hbm %s961_s7, %s613_s11  ;;  %s524_s29 = sshll.u32 %s284_s14, 4  ;;  %s911_s29 = int_to_ptr.vmem [resolvable:$true] %s524_s29 }
 0x1ec   : > { %s526_s8 = sshll.u32 %s522_s17, 4  ;;  %s962_s9 = sshll.u32 %s972_s16, 7  ;;  %s913_s8 = int_to_ptr.hbm [resolvable:$true] %s526_s8 }
 0x1ed   : > { %s675_s13 = sshra.s32 %s911_s29, 4  ;;  %s677_s18 = sshrl.u32 %s962_s9, 4  ;;  %s676_s13 = int_to_ptr.vmem [resolvable:$true] %s675_s13 }
 0x1ee   : > { %s682_s19 = scalar_lea.vmem %s676_s13, %s677_s18  ;;  %s750_s28 = smov [#allocation2]  }
 0x1ef   : > { %p683_p13 = scmp.ne.s32.totalorder %s676_s13, %s682_s19  ;;  %s686_s20 = scalar_lea.vmem %s750_s28, 32 }
 0x1f0   : > { %p688_p2 = scmp.lt.s32.totalorder %s686_s20, %s682_s19 }
 0x1f1   : > { %p684_p0 = pnand %p683_p13, %p903_p12 }
 0x1f3   : > { %p685_p1 = pneg %p684_p0 }
 0x1f5   : > { %p690_p3 = pnand %p688_p2, %p685_p1 }
 0x1f7   : > { %693 = shalt.err (!%p690_p3)
}
 0x1f8   : > { %s694_s14 = sshra.s32 %s913_s8, 4  ;;  %s705_s17 = scalar_lea.hbm %s961_s7, 24  ;;  %s695_s14 = int_to_ptr.hbm [resolvable:$true] %s694_s14 }
 0x1f9   : > { %s701_s11 = scalar_lea.hbm %s695_s14, %s677_s18  ;;  %p706_p8 = scmp.lt.s32.totalorder %s695_s14, %s961_s7 }
 0x1fa   : > { %p702_p4 = scmp.ne.s32.totalorder %s695_s14, %s701_s11  ;;  %p707_p9 = scmp.lt.s32.totalorder %s705_s17, %s701_s11 }
 0x1fc   : > { %p703_p5 = pnand %p702_p4, %p903_p12  ;;  %p708_p10 = por %p707_p9, %p706_p8 }
 0x1fe   : > { %p704_p7 = pneg %p703_p5 }
 0x200   : > { %p709_p11 = pnand %p708_p10, %p704_p7 }
 0x202   : > { %712 = shalt.err (!%p709_p11)
}
 0x203   : > { %s751_s19 = smov 128   ;;  %s752_s18 = smov 8  }
 0x204   : > { %s966_s28 = sshll.u32 %s972_s16, 7 }
 0x205   : > { %532 = dma.vmem_to_hbm [thread:$0]  (%p903_p12), %s911_s29, %s966_s28, %s913_s8, %s894_s15, %s751_s19, %s751_s19, %s752_s18  }
 0x206 PF: > { %p624_p13 = scmp.ge.s32.totalorder %s748_s27, 2  ;;  %s541_s9 = sand.u32 1, %s736_s24  }
 0x207   : > { %s542_s20 = scalar_lea.sflag [#allocation3], %s541_s9 }
 0x208   : > { %p621_p0 = pnand %p624_p13, %p835_p6 }
 0x20a   : > { %p622_p1 = pneg %p621_p0 }
 0x20c   : > { %731 = dma.done.wait (%p622_p1), %s542_s20, 256  }
 0x20d   : > { %733 = vsyncadd (%p622_p1), %s542_s20, 4294967040  ;;  %p17_p2 = scmp.ge.s32.totalorder %s818_s30, 4   ;;  %s967_s24 = smov %s740_s25 }
 0x20e   : > { %s968_s25 = smov %s744_s26  ;;  %s969_s26 = smov %s829_s10 }
 0x20f   : > { %s970_s27 = smov %s818_s30  ;;  %19 = sbr.rel (!%p17_p2) target bundleno = 3 (0x3), region = 83 }
 0x214   :  { %548 = vsyncpa [#allocation3], 1 }
 0x215   :  { %550 = vsyncpa [#allocation3 + $0x1], 1 }

</bundles_post_ra>
